<compile_context>
chip_gen: v5e
topology: v5e:2x2
jax: 0.10.0
libtpu: 0.0.40
codegen_flags: <defaults>
</compile_context>

<pallas_src>
import functools

import jax
import jax.numpy as jnp
from jax.experimental import pallas as pl
from jax.experimental.pallas import tpu as pltpu


def _sigmoid(x):
    # nn.Sigmoid(): 1/(1+exp(-x)) == 0.5*(tanh(0.5*x)+1); tanh is one EUP op.
    return 0.5 * (jnp.tanh(0.5 * x) + 1.0)


def _round_up(n, m):
    return ((n + m - 1) // m) * m


def _decoder_kernel(S,
                    x_ref, zc_ref,
                    w1_ref,
                    w2_ref, b2_ref,
                    w3_ref, b3_ref,
                    w4_ref, b4_ref,
                    wm_ref, bm_ref,
                    ws_ref, bs_ref,
                    mu_ref, std_ref):
    """One (batch, row-tile) step, transposed orientation.

    x_ref : (1, x_dim, tile_t)      target_x tile (transposed, lane-dense)
    zc_ref: (1, hidden, S)          per-sample  z @ W1z + b1  columns
    w*_ref: transposed weights (out, in); b*_ref: column biases (out, 1)
    mu_ref/std_ref: (S, 1, y_dim, tile_t)   lane-dense outputs
    """
    xt = x_ref[0].astype(w1_ref.dtype)                      # (x_dim, tile_t)
    # Layer-1 target_x contribution: computed ONCE per tile, shared by all S.
    t1 = jnp.dot(w1_ref[...], xt, preferred_element_type=jnp.float32)
    zc = zc_ref[0]                                          # (hidden, S), f32

    # Hoist resident weight/bias loads out of the per-sample loop.
    w2 = w2_ref[...]; b2 = b2_ref[...]
    w3 = w3_ref[...]; b3 = b3_ref[...]
    w4 = w4_ref[...]; b4 = b4_ref[...]
    wm = wm_ref[...]; bm = bm_ref[...]
    ws = ws_ref[...]; bs = bs_ref[...]

    # S is small (number of latent samples) -> static unroll.
    for s in range(S):
        h = _sigmoid(t1 + zc[:, s:s + 1])                   # (hidden, tile_t)
        h = _sigmoid(jnp.dot(w2, h.astype(w2.dtype),
                             preferred_element_type=jnp.float32) + b2)
        h = _sigmoid(jnp.dot(w3, h.astype(w3.dtype),
                             preferred_element_type=jnp.float32) + b3)
        h = _sigmoid(jnp.dot(w4, h.astype(w4.dtype),
                             preferred_element_type=jnp.float32) + b4)
        hm = h.astype(wm.dtype)
        mu = jnp.dot(wm, hm, preferred_element_type=jnp.float32) + bm
        logvar = jnp.dot(ws, hm, preferred_element_type=jnp.float32) + bs
        mu_ref[s, 0] = mu.astype(mu_ref.dtype)
        std_ref[s, 0] = jnp.exp(0.5 * logvar).astype(std_ref.dtype)


def init_decoder_params(key, z_dim, x_dim, y_dim, hidden_size):
    """Xavier-normal weights + small uniform biases (stored as (in, out))."""
    def xavier(k, fan_in, fan_out):
        std = jnp.sqrt(2.0 / (fan_in + fan_out))
        return jax.random.normal(k, (fan_in, fan_out), dtype=jnp.float32) * std

    def bias(k, fan_in, fan_out):
        bound = 1.0 / jnp.sqrt(fan_in)
        return jax.random.uniform(k, (1, fan_out), dtype=jnp.float32,
                                  minval=-bound, maxval=bound)

    in_dim = z_dim + x_dim
    ks = jax.random.split(key, 12)
    return {
        "w1": xavier(ks[0], in_dim, hidden_size),      "b1": bias(ks[1], in_dim, hidden_size),
        "w2": xavier(ks[2], hidden_size, hidden_size), "b2": bias(ks[3], hidden_size, hidden_size),
        "w3": xavier(ks[4], hidden_size, hidden_size), "b3": bias(ks[5], hidden_size, hidden_size),
        "w4": xavier(ks[6], hidden_size, hidden_size), "b4": bias(ks[7], hidden_size, hidden_size),
        "wm": xavier(ks[8], hidden_size, y_dim),       "bm": bias(ks[9], hidden_size, y_dim),
        "ws": xavier(ks[10], hidden_size, y_dim),      "bs": bias(ks[11], hidden_size, y_dim),
    }


def decoder_forward(target_x, z, params, y_dim, *, max_tile_t=1024, mxu_dtype=None):
    """Mirrors Decoder.forward(target_x, z) -> (mu, std).

    target_x: (B, T, x_dim)   z: (S, B, z_dim)
    returns mu, std of shape (B*S, T, y_dim)  (row g = s*B + b, torch order).
    mxu_dtype: optional matmul-operand dtype (e.g. jnp.bfloat16 on v6e/v7x);
               accumulation and element-wise math stay float32.
    """
    B, T, x_dim = target_x.shape
    S = z.shape[0]
    hidden = params["w2"].shape[0]

    # ---- row tile along num_points: multiple of 128 -> lane-dense stores ----
    max_tile_t = max(128, _round_up(max_tile_t, 128))
    tile_t = min(max_tile_t, _round_up(T, 128))
    T_pad = _round_up(T, tile_t)

    # target_x transposed (B, x_dim, T_pad): lane-dense input DMA, no astype.
    x_t = jnp.swapaxes(target_x, 1, 2)
    if T_pad != T:
        x_t = jnp.pad(x_t, ((0, 0), (0, 0), (0, T_pad - T)))

    # ---- tiny wrapper-side preprocessing of the parameters ----------------
    w1 = params["w1"]
    w1x, w1z = w1[:x_dim], w1[x_dim:]
    # Per-(sample,batch) layer-1 latent contribution (includes b1), float32.
    zc = jnp.einsum("sbz,zh->sbh", z.astype(jnp.float32),
                    w1z.astype(jnp.float32)) + params["b1"].astype(jnp.float32)
    zc_t = jnp.transpose(zc, (1, 2, 0))                    # (B, hidden, S)

    mxu = jnp.float32 if mxu_dtype is None else mxu_dtype

    def mm(a):        # matmul operand (transposed weight) in MXU dtype
        return a.T.astype(mxu)

    def col(b):       # bias as a float32 column vector
        return b.T.astype(jnp.float32)

    weight_args = [mm(w1x),
                   mm(params["w2"]), col(params["b2"]),
                   mm(params["w3"]), col(params["b3"]),
                   mm(params["w4"]), col(params["b4"]),
                   mm(params["wm"]), col(params["bm"]),
                   mm(params["ws"]), col(params["bs"])]

    grid = (B, T_pad // tile_t)

    in_specs = [
        pl.BlockSpec((1, x_dim, tile_t), lambda b, t: (b, 0, t)),   # target_x tile
        pl.BlockSpec((1, hidden, S), lambda b, t: (b, 0, 0)),       # zc columns per batch
    ] + [
        # full-array blocks, constant index -> fetched once, stay resident
        pl.BlockSpec(a.shape, lambda b, t: (0, 0)) for a in weight_args
    ]

    out_dtype = target_x.dtype
    out_shape = (jax.ShapeDtypeStruct((S, B, y_dim, T_pad), out_dtype),
                 jax.ShapeDtypeStruct((S, B, y_dim, T_pad), out_dtype))
    out_specs = [pl.BlockSpec((S, 1, y_dim, tile_t), lambda b, t: (0, b, 0, t)),
                 pl.BlockSpec((S, 1, y_dim, tile_t), lambda b, t: (0, b, 0, t))]

    mu_t, std_t = pl.pallas_call(
        functools.partial(_decoder_kernel, S),
        out_shape=out_shape,
        grid_spec=pltpu.PrefetchScalarGridSpec(
            num_scalar_prefetch=0,
            grid=grid,
            in_specs=in_specs,
            out_specs=out_specs,
        ),
        compiler_params=pltpu.CompilerParams(
            dimension_semantics=("parallel", "parallel"),
            vmem_limit_bytes=48 * 1024 * 1024),
    )(x_t, zc_t, *weight_args)

    # Layout plumbing back to the module's (B*S, T, y_dim) output format.
    mu = jnp.transpose(mu_t, (0, 1, 3, 2)).reshape(S * B, T_pad, y_dim)
    std = jnp.transpose(std_t, (0, 1, 3, 2)).reshape(S * B, T_pad, y_dim)
    if T_pad != T:
        mu = mu[:, :T]
        std = std[:, :T]
    return mu, std


def decoder_forward_ref(target_x, z, params, y_dim):
    """Pure-JAX reference implementing the exact torch forward (verification)."""
    B, T, x_dim = target_x.shape
    S = z.shape[0]
    in_dim = params["w1"].shape[0]
    z_dim = in_dim - x_dim
    z_flat = z.reshape(B * S, 1, z_dim)
    z_rep = jnp.broadcast_to(z_flat, (B * S, T, z_dim))
    tx_rep = jnp.tile(target_x, (S, 1, 1))
    x = jnp.concatenate([tx_rep, z_rep], axis=2).astype(jnp.float32)

    def sig(v):
        return 1.0 / (1.0 + jnp.exp(-v))

    h = sig(x @ params["w1"] + params["b1"])
    h = sig(h @ params["w2"] + params["b2"])
    h = sig(h @ params["w3"] + params["b3"])
    h = sig(h @ params["w4"] + params["b4"])
    mu = h @ params["wm"] + params["bm"]
    logvar = h @ params["ws"] + params["bs"]
    return mu, jnp.exp(0.5 * logvar)


if __name__ == "__main__":
    # Small shapes consistent with the module's forward:
    #   target_x: (batch, num_points, x_dim), z: (num_samples, batch, z_dim)
    batch, num_points, x_dim = 2, 8, 4
    num_samples, z_dim = 2, 4
    hidden_size, y_dim = 32, 2

    key = jax.random.PRNGKey(0)
    k_params, k_x, k_z, k_x2, k_z2 = jax.random.split(key, 5)

    params = init_decoder_params(k_params, z_dim, x_dim, y_dim, hidden_size)
    target_x = jax.random.normal(k_x, (batch, num_points, x_dim), dtype=jnp.float32)
    z = jax.random.normal(k_z, (num_samples, batch, z_dim), dtype=jnp.float32)

    # --- float32 MXU path (bit-for-bit algebraic rewrite of the module) ----
    fwd_f32 = jax.jit(functools.partial(decoder_forward, y_dim=y_dim))
    mu, std = fwd_f32(target_x, z, params)
    mu, std = jax.block_until_ready((mu, std))

    mu_ref, std_ref = decoder_forward_ref(target_x, z, params, y_dim)
    assert mu.shape == (batch * num_samples, num_points, y_dim)
    assert std.shape == (batch * num_samples, num_points, y_dim)
    assert jnp.allclose(mu, mu_ref, atol=1e-4, rtol=1e-4)
    assert jnp.allclose(std, std_ref, atol=1e-4, rtol=1e-4)

    # --- multi-tile / padded-T / S=3 path (exercises grid + padding) -------
    T2, S2 = 200, 3
    target_x2 = jax.random.normal(k_x2, (batch, T2, x_dim), dtype=jnp.float32)
    z2 = jax.random.normal(k_z2, (S2, batch, z_dim), dtype=jnp.float32)
    fwd_small_tile = jax.jit(functools.partial(decoder_forward, y_dim=y_dim,
                                               max_tile_t=128))
    mu2, std2 = jax.block_until_ready(fwd_small_tile(target_x2, z2, params))
    mu2_ref, std2_ref = decoder_forward_ref(target_x2, z2, params, y_dim)
    assert mu2.shape == (batch * S2, T2, y_dim)
    assert jnp.allclose(mu2, mu2_ref, atol=1e-4, rtol=1e-4)
    assert jnp.allclose(std2, std2_ref, atol=1e-4, rtol=1e-4)

    # --- bf16 MXU operands (v6e/v7x fast path), f32 accumulation/elementwise
    fwd_bf16 = jax.jit(functools.partial(decoder_forward, y_dim=y_dim,
                                         mxu_dtype=jnp.bfloat16))
    mu_b, std_b = jax.block_until_ready(fwd_bf16(target_x, z, params))
    assert mu_b.shape == mu_ref.shape
    assert float(jnp.max(jnp.abs(mu_b - mu_ref))) < 0.1
    assert float(jnp.max(jnp.abs(std_b - std_ref))) < 0.1

    print("KERNEL_OK")
</pallas_src>

<mosaic_0001>
module attributes {stable_mosaic.version = 11 : i64} {
  func.func @_decoder_kernel(%arg0: i32, %arg1: i32, %arg2: memref<1x4x128xf32, #tpu.memory_space<vmem>>, %arg3: memref<1x32x2xf32, #tpu.memory_space<vmem>>, %arg4: memref<32x4xf32, #tpu.memory_space<vmem>>, %arg5: memref<32x32xf32, #tpu.memory_space<vmem>>, %arg6: memref<32x1xf32, #tpu.memory_space<vmem>>, %arg7: memref<32x32xf32, #tpu.memory_space<vmem>>, %arg8: memref<32x1xf32, #tpu.memory_space<vmem>>, %arg9: memref<32x32xf32, #tpu.memory_space<vmem>>, %arg10: memref<32x1xf32, #tpu.memory_space<vmem>>, %arg11: memref<2x32xf32, #tpu.memory_space<vmem>>, %arg12: memref<2x1xf32, #tpu.memory_space<vmem>>, %arg13: memref<2x32xf32, #tpu.memory_space<vmem>>, %arg14: memref<2x1xf32, #tpu.memory_space<vmem>>, %arg15: memref<2x1x2x128xf32, #tpu.memory_space<vmem>>, %arg16: memref<2x1x2x128xf32, #tpu.memory_space<vmem>>) attributes {dimension_semantics = [#tpu.dimension_semantics<parallel>, #tpu.dimension_semantics<parallel>], iteration_bounds = array<i64: 2, 1>, scalar_prefetch = 0 : i64, scratch_operands = 0 : i64, tpu.core_type = #tpu.core_type<tc>, window_params = [{transform_indices = @transform_0, window_bounds = array<i64: 1, 4, 128>}, {transform_indices = @transform_1, window_bounds = array<i64: 1, 32, 2>}, {pipeline_mode = #tpu.pipeline_mode<synchronous>, transform_indices = @transform_2, window_bounds = array<i64: 32, 4>}, {pipeline_mode = #tpu.pipeline_mode<synchronous>, transform_indices = @transform_3, window_bounds = array<i64: 32, 32>}, {pipeline_mode = #tpu.pipeline_mode<synchronous>, transform_indices = @transform_4, window_bounds = array<i64: 32, 1>}, {pipeline_mode = #tpu.pipeline_mode<synchronous>, transform_indices = @transform_5, window_bounds = array<i64: 32, 32>}, {pipeline_mode = #tpu.pipeline_mode<synchronous>, transform_indices = @transform_6, window_bounds = array<i64: 32, 1>}, {pipeline_mode = #tpu.pipeline_mode<synchronous>, transform_indices = @transform_7, window_bounds = array<i64: 32, 32>}, {pipeline_mode = #tpu.pipeline_mode<synchronous>, transform_indices = @transform_8, window_bounds = array<i64: 32, 1>}, {pipeline_mode = #tpu.pipeline_mode<synchronous>, transform_indices = @transform_9, window_bounds = array<i64: 2, 32>}, {pipeline_mode = #tpu.pipeline_mode<synchronous>, transform_indices = @transform_10, window_bounds = array<i64: 2, 1>}, {pipeline_mode = #tpu.pipeline_mode<synchronous>, transform_indices = @transform_11, window_bounds = array<i64: 2, 32>}, {pipeline_mode = #tpu.pipeline_mode<synchronous>, transform_indices = @transform_12, window_bounds = array<i64: 2, 1>}, {transform_indices = @transform_13, window_bounds = array<i64: 2, 1, 2, 128>}, {transform_indices = @transform_14, window_bounds = array<i64: 2, 1, 2, 128>}]} {
    %c0 = arith.constant 0 : index
    %c0_0 = arith.constant 0 : index
    %c0_1 = arith.constant 0 : index
    %0 = vector.load %arg2[%c0, %c0_0, %c0_1] : memref<1x4x128xf32, #tpu.memory_space<vmem>>, vector<1x4x128xf32>
    %1 = vector.shape_cast %0 : vector<1x4x128xf32> to vector<4x128xf32>
    %c0_2 = arith.constant 0 : index
    %c0_3 = arith.constant 0 : index
    %2 = vector.load %arg4[%c0_2, %c0_3] : memref<32x4xf32, #tpu.memory_space<vmem>>, vector<32x4xf32>
    %cst = arith.constant dense<0.000000e+00> : vector<32x128xf32>
    %3 = tpu.matmul %2, %1, %cst {dimension_numbers = #tpu.dot_dimension_numbers<[1], [0], [0], [1], [0, 0, 1, 1], [], []>} : vector<32x4xf32>, vector<4x128xf32>, vector<32x128xf32> -> vector<32x128xf32>
    %c0_4 = arith.constant 0 : index
    %c0_5 = arith.constant 0 : index
    %c0_6 = arith.constant 0 : index
    %4 = vector.load %arg3[%c0_4, %c0_5, %c0_6] : memref<1x32x2xf32, #tpu.memory_space<vmem>>, vector<1x32x2xf32>
    %5 = vector.shape_cast %4 : vector<1x32x2xf32> to vector<32x2xf32>
    %c0_7 = arith.constant 0 : index
    %c0_8 = arith.constant 0 : index
    %6 = vector.load %arg5[%c0_7, %c0_8] : memref<32x32xf32, #tpu.memory_space<vmem>>, vector<32x32xf32>
    %c0_9 = arith.constant 0 : index
    %c0_10 = arith.constant 0 : index
    %7 = vector.load %arg6[%c0_9, %c0_10] : memref<32x1xf32, #tpu.memory_space<vmem>>, vector<32x1xf32>
    %c0_11 = arith.constant 0 : index
    %c0_12 = arith.constant 0 : index
    %8 = vector.load %arg7[%c0_11, %c0_12] : memref<32x32xf32, #tpu.memory_space<vmem>>, vector<32x32xf32>
    %c0_13 = arith.constant 0 : index
    %c0_14 = arith.constant 0 : index
    %9 = vector.load %arg8[%c0_13, %c0_14] : memref<32x1xf32, #tpu.memory_space<vmem>>, vector<32x1xf32>
    %c0_15 = arith.constant 0 : index
    %c0_16 = arith.constant 0 : index
    %10 = vector.load %arg9[%c0_15, %c0_16] : memref<32x32xf32, #tpu.memory_space<vmem>>, vector<32x32xf32>
    %c0_17 = arith.constant 0 : index
    %c0_18 = arith.constant 0 : index
    %11 = vector.load %arg10[%c0_17, %c0_18] : memref<32x1xf32, #tpu.memory_space<vmem>>, vector<32x1xf32>
    %c0_19 = arith.constant 0 : index
    %c0_20 = arith.constant 0 : index
    %12 = vector.load %arg11[%c0_19, %c0_20] : memref<2x32xf32, #tpu.memory_space<vmem>>, vector<2x32xf32>
    %c0_21 = arith.constant 0 : index
    %c0_22 = arith.constant 0 : index
    %13 = vector.load %arg12[%c0_21, %c0_22] : memref<2x1xf32, #tpu.memory_space<vmem>>, vector<2x1xf32>
    %c0_23 = arith.constant 0 : index
    %c0_24 = arith.constant 0 : index
    %14 = vector.load %arg13[%c0_23, %c0_24] : memref<2x32xf32, #tpu.memory_space<vmem>>, vector<2x32xf32>
    %c0_25 = arith.constant 0 : index
    %c0_26 = arith.constant 0 : index
    %15 = vector.load %arg14[%c0_25, %c0_26] : memref<2x1xf32, #tpu.memory_space<vmem>>, vector<2x1xf32>
    %16 = vector.extract_strided_slice %5 {offsets = [0, 0], sizes = [32, 1], strides = [1, 1]} : vector<32x2xf32> to vector<32x1xf32>
    %17 = vector.broadcast %16 : vector<32x1xf32> to vector<32x128xf32>
    %18 = arith.addf %3, %17 : vector<32x128xf32>
    %cst_27 = arith.constant 5.000000e-01 : f32
    %19 = vector.broadcast %cst_27 : f32 to vector<32x128xf32>
    %20 = arith.mulf %19, %18 : vector<32x128xf32>
    %21 = math.tanh %20 : vector<32x128xf32>
    %cst_28 = arith.constant 1.000000e+00 : f32
    %22 = vector.broadcast %cst_28 : f32 to vector<32x128xf32>
    %23 = arith.addf %21, %22 : vector<32x128xf32>
    %cst_29 = arith.constant 5.000000e-01 : f32
    %24 = vector.broadcast %cst_29 : f32 to vector<32x128xf32>
    %25 = arith.mulf %24, %23 : vector<32x128xf32>
    %cst_30 = arith.constant dense<0.000000e+00> : vector<32x128xf32>
    %26 = tpu.matmul %6, %25, %cst_30 {dimension_numbers = #tpu.dot_dimension_numbers<[1], [0], [0], [1], [0, 0, 1, 1], [], []>} : vector<32x32xf32>, vector<32x128xf32>, vector<32x128xf32> -> vector<32x128xf32>
    %27 = vector.broadcast %7 : vector<32x1xf32> to vector<32x128xf32>
    %28 = arith.addf %26, %27 : vector<32x128xf32>
    %cst_31 = arith.constant 5.000000e-01 : f32
    %29 = vector.broadcast %cst_31 : f32 to vector<32x128xf32>
    %30 = arith.mulf %29, %28 : vector<32x128xf32>
    %31 = math.tanh %30 : vector<32x128xf32>
    %cst_32 = arith.constant 1.000000e+00 : f32
    %32 = vector.broadcast %cst_32 : f32 to vector<32x128xf32>
    %33 = arith.addf %31, %32 : vector<32x128xf32>
    %cst_33 = arith.constant 5.000000e-01 : f32
    %34 = vector.broadcast %cst_33 : f32 to vector<32x128xf32>
    %35 = arith.mulf %34, %33 : vector<32x128xf32>
    %cst_34 = arith.constant dense<0.000000e+00> : vector<32x128xf32>
    %36 = tpu.matmul %8, %35, %cst_34 {dimension_numbers = #tpu.dot_dimension_numbers<[1], [0], [0], [1], [0, 0, 1, 1], [], []>} : vector<32x32xf32>, vector<32x128xf32>, vector<32x128xf32> -> vector<32x128xf32>
    %37 = vector.broadcast %9 : vector<32x1xf32> to vector<32x128xf32>
    %38 = arith.addf %36, %37 : vector<32x128xf32>
    %cst_35 = arith.constant 5.000000e-01 : f32
    %39 = vector.broadcast %cst_35 : f32 to vector<32x128xf32>
    %40 = arith.mulf %39, %38 : vector<32x128xf32>
    %41 = math.tanh %40 : vector<32x128xf32>
    %cst_36 = arith.constant 1.000000e+00 : f32
    %42 = vector.broadcast %cst_36 : f32 to vector<32x128xf32>
    %43 = arith.addf %41, %42 : vector<32x128xf32>
    %cst_37 = arith.constant 5.000000e-01 : f32
    %44 = vector.broadcast %cst_37 : f32 to vector<32x128xf32>
    %45 = arith.mulf %44, %43 : vector<32x128xf32>
    %cst_38 = arith.constant dense<0.000000e+00> : vector<32x128xf32>
    %46 = tpu.matmul %10, %45, %cst_38 {dimension_numbers = #tpu.dot_dimension_numbers<[1], [0], [0], [1], [0, 0, 1, 1], [], []>} : vector<32x32xf32>, vector<32x128xf32>, vector<32x128xf32> -> vector<32x128xf32>
    %47 = vector.broadcast %11 : vector<32x1xf32> to vector<32x128xf32>
    %48 = arith.addf %46, %47 : vector<32x128xf32>
    %cst_39 = arith.constant 5.000000e-01 : f32
    %49 = vector.broadcast %cst_39 : f32 to vector<32x128xf32>
    %50 = arith.mulf %49, %48 : vector<32x128xf32>
    %51 = math.tanh %50 : vector<32x128xf32>
    %cst_40 = arith.constant 1.000000e+00 : f32
    %52 = vector.broadcast %cst_40 : f32 to vector<32x128xf32>
    %53 = arith.addf %51, %52 : vector<32x128xf32>
    %cst_41 = arith.constant 5.000000e-01 : f32
    %54 = vector.broadcast %cst_41 : f32 to vector<32x128xf32>
    %55 = arith.mulf %54, %53 : vector<32x128xf32>
    %cst_42 = arith.constant dense<0.000000e+00> : vector<2x128xf32>
    %56 = tpu.matmul %12, %55, %cst_42 {dimension_numbers = #tpu.dot_dimension_numbers<[1], [0], [0], [1], [0, 0, 1, 1], [], []>} : vector<2x32xf32>, vector<32x128xf32>, vector<2x128xf32> -> vector<2x128xf32>
    %57 = vector.broadcast %13 : vector<2x1xf32> to vector<2x128xf32>
    %58 = arith.addf %56, %57 : vector<2x128xf32>
    %cst_43 = arith.constant dense<0.000000e+00> : vector<2x128xf32>
    %59 = tpu.matmul %14, %55, %cst_43 {dimension_numbers = #tpu.dot_dimension_numbers<[1], [0], [0], [1], [0, 0, 1, 1], [], []>} : vector<2x32xf32>, vector<32x128xf32>, vector<2x128xf32> -> vector<2x128xf32>
    %60 = vector.broadcast %15 : vector<2x1xf32> to vector<2x128xf32>
    %61 = arith.addf %59, %60 : vector<2x128xf32>
    %c0_44 = arith.constant 0 : index
    %c0_45 = arith.constant 0 : index
    %c0_46 = arith.constant 0 : index
    %c0_47 = arith.constant 0 : index
    %62 = vector.load %arg15[%c0_44, %c0_45, %c0_46, %c0_47] : memref<2x1x2x128xf32, #tpu.memory_space<vmem>>, vector<1x1x2x128xf32>
    %63 = vector.shape_cast %62 : vector<1x1x2x128xf32> to vector<2x128xf32>
    %64 = vector.shape_cast %58 : vector<2x128xf32> to vector<1x1x2x128xf32>
    tpu.vector_store %arg15[%c0_44, %c0_45, %c0_46, %c0_47], %64 {strides = array<i32>} : memref<2x1x2x128xf32, #tpu.memory_space<vmem>>, vector<1x1x2x128xf32>,
    %cst_48 = arith.constant 5.000000e-01 : f32
    %65 = vector.broadcast %cst_48 : f32 to vector<2x128xf32>
    %66 = arith.mulf %65, %61 : vector<2x128xf32>
    %67 = math.exp %66 : vector<2x128xf32>
    %c0_49 = arith.constant 0 : index
    %c0_50 = arith.constant 0 : index
    %c0_51 = arith.constant 0 : index
    %c0_52 = arith.constant 0 : index
    %68 = vector.load %arg16[%c0_49, %c0_50, %c0_51, %c0_52] : memref<2x1x2x128xf32, #tpu.memory_space<vmem>>, vector<1x1x2x128xf32>
    %69 = vector.shape_cast %68 : vector<1x1x2x128xf32> to vector<2x128xf32>
    %70 = vector.shape_cast %67 : vector<2x128xf32> to vector<1x1x2x128xf32>
    tpu.vector_store %arg16[%c0_49, %c0_50, %c0_51, %c0_52], %70 {strides = array<i32>} : memref<2x1x2x128xf32, #tpu.memory_space<vmem>>, vector<1x1x2x128xf32>,
    %71 = vector.extract_strided_slice %5 {offsets = [0, 1], sizes = [32, 1], strides = [1, 1]} : vector<32x2xf32> to vector<32x1xf32>
    %72 = vector.broadcast %71 : vector<32x1xf32> to vector<32x128xf32>
    %73 = arith.addf %3, %72 : vector<32x128xf32>
    %cst_53 = arith.constant 5.000000e-01 : f32
    %74 = vector.broadcast %cst_53 : f32 to vector<32x128xf32>
    %75 = arith.mulf %74, %73 : vector<32x128xf32>
    %76 = math.tanh %75 : vector<32x128xf32>
    %cst_54 = arith.constant 1.000000e+00 : f32
    %77 = vector.broadcast %cst_54 : f32 to vector<32x128xf32>
    %78 = arith.addf %76, %77 : vector<32x128xf32>
    %cst_55 = arith.constant 5.000000e-01 : f32
    %79 = vector.broadcast %cst_55 : f32 to vector<32x128xf32>
    %80 = arith.mulf %79, %78 : vector<32x128xf32>
    %cst_56 = arith.constant dense<0.000000e+00> : vector<32x128xf32>
    %81 = tpu.matmul %6, %80, %cst_56 {dimension_numbers = #tpu.dot_dimension_numbers<[1], [0], [0], [1], [0, 0, 1, 1], [], []>} : vector<32x32xf32>, vector<32x128xf32>, vector<32x128xf32> -> vector<32x128xf32>
    %82 = vector.broadcast %7 : vector<32x1xf32> to vector<32x128xf32>
    %83 = arith.addf %81, %82 : vector<32x128xf32>
    %cst_57 = arith.constant 5.000000e-01 : f32
    %84 = vector.broadcast %cst_57 : f32 to vector<32x128xf32>
    %85 = arith.mulf %84, %83 : vector<32x128xf32>
    %86 = math.tanh %85 : vector<32x128xf32>
    %cst_58 = arith.constant 1.000000e+00 : f32
    %87 = vector.broadcast %cst_58 : f32 to vector<32x128xf32>
    %88 = arith.addf %86, %87 : vector<32x128xf32>
    %cst_59 = arith.constant 5.000000e-01 : f32
    %89 = vector.broadcast %cst_59 : f32 to vector<32x128xf32>
    %90 = arith.mulf %89, %88 : vector<32x128xf32>
    %cst_60 = arith.constant dense<0.000000e+00> : vector<32x128xf32>
    %91 = tpu.matmul %8, %90, %cst_60 {dimension_numbers = #tpu.dot_dimension_numbers<[1], [0], [0], [1], [0, 0, 1, 1], [], []>} : vector<32x32xf32>, vector<32x128xf32>, vector<32x128xf32> -> vector<32x128xf32>
    %92 = vector.broadcast %9 : vector<32x1xf32> to vector<32x128xf32>
    %93 = arith.addf %91, %92 : vector<32x128xf32>
    %cst_61 = arith.constant 5.000000e-01 : f32
    %94 = vector.broadcast %cst_61 : f32 to vector<32x128xf32>
    %95 = arith.mulf %94, %93 : vector<32x128xf32>
    %96 = math.tanh %95 : vector<32x128xf32>
    %cst_62 = arith.constant 1.000000e+00 : f32
    %97 = vector.broadcast %cst_62 : f32 to vector<32x128xf32>
    %98 = arith.addf %96, %97 : vector<32x128xf32>
    %cst_63 = arith.constant 5.000000e-01 : f32
    %99 = vector.broadcast %cst_63 : f32 to vector<32x128xf32>
    %100 = arith.mulf %99, %98 : vector<32x128xf32>
    %cst_64 = arith.constant dense<0.000000e+00> : vector<32x128xf32>
    %101 = tpu.matmul %10, %100, %cst_64 {dimension_numbers = #tpu.dot_dimension_numbers<[1], [0], [0], [1], [0, 0, 1, 1], [], []>} : vector<32x32xf32>, vector<32x128xf32>, vector<32x128xf32> -> vector<32x128xf32>
    %102 = vector.broadcast %11 : vector<32x1xf32> to vector<32x128xf32>
    %103 = arith.addf %101, %102 : vector<32x128xf32>
    %cst_65 = arith.constant 5.000000e-01 : f32
    %104 = vector.broadcast %cst_65 : f32 to vector<32x128xf32>
    %105 = arith.mulf %104, %103 : vector<32x128xf32>
    %106 = math.tanh %105 : vector<32x128xf32>
    %cst_66 = arith.constant 1.000000e+00 : f32
    %107 = vector.broadcast %cst_66 : f32 to vector<32x128xf32>
    %108 = arith.addf %106, %107 : vector<32x128xf32>
    %cst_67 = arith.constant 5.000000e-01 : f32
    %109 = vector.broadcast %cst_67 : f32 to vector<32x128xf32>
    %110 = arith.mulf %109, %108 : vector<32x128xf32>
    %cst_68 = arith.constant dense<0.000000e+00> : vector<2x128xf32>
    %111 = tpu.matmul %12, %110, %cst_68 {dimension_numbers = #tpu.dot_dimension_numbers<[1], [0], [0], [1], [0, 0, 1, 1], [], []>} : vector<2x32xf32>, vector<32x128xf32>, vector<2x128xf32> -> vector<2x128xf32>
    %112 = vector.broadcast %13 : vector<2x1xf32> to vector<2x128xf32>
    %113 = arith.addf %111, %112 : vector<2x128xf32>
    %cst_69 = arith.constant dense<0.000000e+00> : vector<2x128xf32>
    %114 = tpu.matmul %14, %110, %cst_69 {dimension_numbers = #tpu.dot_dimension_numbers<[1], [0], [0], [1], [0, 0, 1, 1], [], []>} : vector<2x32xf32>, vector<32x128xf32>, vector<2x128xf32> -> vector<2x128xf32>
    %115 = vector.broadcast %15 : vector<2x1xf32> to vector<2x128xf32>
    %116 = arith.addf %114, %115 : vector<2x128xf32>
    %c1 = arith.constant 1 : index
    %c0_70 = arith.constant 0 : index
    %c0_71 = arith.constant 0 : index
    %c0_72 = arith.constant 0 : index
    %117 = vector.load %arg15[%c1, %c0_70, %c0_71, %c0_72] : memref<2x1x2x128xf32, #tpu.memory_space<vmem>>, vector<1x1x2x128xf32>
    %118 = vector.shape_cast %117 : vector<1x1x2x128xf32> to vector<2x128xf32>
    %119 = vector.shape_cast %113 : vector<2x128xf32> to vector<1x1x2x128xf32>
    tpu.vector_store %arg15[%c1, %c0_70, %c0_71, %c0_72], %119 {strides = array<i32>} : memref<2x1x2x128xf32, #tpu.memory_space<vmem>>, vector<1x1x2x128xf32>,
    %cst_73 = arith.constant 5.000000e-01 : f32
    %120 = vector.broadcast %cst_73 : f32 to vector<2x128xf32>
    %121 = arith.mulf %120, %116 : vector<2x128xf32>
    %122 = math.exp %121 : vector<2x128xf32>
    %c1_74 = arith.constant 1 : index
    %c0_75 = arith.constant 0 : index
    %c0_76 = arith.constant 0 : index
    %c0_77 = arith.constant 0 : index
    %123 = vector.load %arg16[%c1_74, %c0_75, %c0_76, %c0_77] : memref<2x1x2x128xf32, #tpu.memory_space<vmem>>, vector<1x1x2x128xf32>
    %124 = vector.shape_cast %123 : vector<1x1x2x128xf32> to vector<2x128xf32>
    %125 = vector.shape_cast %122 : vector<2x128xf32> to vector<1x1x2x128xf32>
    tpu.vector_store %arg16[%c1_74, %c0_75, %c0_76, %c0_77], %125 {strides = array<i32>} : memref<2x1x2x128xf32, #tpu.memory_space<vmem>>, vector<1x1x2x128xf32>,
    return
  }
  func.func @transform_0(%arg0: i32, %arg1: i32) -> (i32, i32, i32) {
    %c0_i32 = arith.constant 0 : i32
    %c0_i32_0 = arith.constant 0 : i32
    return %arg0, %c0_i32, %arg1 : i32, i32, i32
  }
  func.func @transform_1(%arg0: i32, %arg1: i32) -> (i32, i32, i32) {
    %c0_i32 = arith.constant 0 : i32
    %c0_i32_0 = arith.constant 0 : i32
    %c0_i32_1 = arith.constant 0 : i32
    return %arg0, %c0_i32, %c0_i32_0 : i32, i32, i32
  }
  func.func @transform_2(%arg0: i32, %arg1: i32) -> (i32, i32) {
    %c0_i32 = arith.constant 0 : i32
    %c0_i32_0 = arith.constant 0 : i32
    %c0_i32_1 = arith.constant 0 : i32
    return %c0_i32, %c0_i32_0 : i32, i32
  }
  func.func @transform_3(%arg0: i32, %arg1: i32) -> (i32, i32) {
    %c0_i32 = arith.constant 0 : i32
    %c0_i32_0 = arith.constant 0 : i32
    %c0_i32_1 = arith.constant 0 : i32
    return %c0_i32, %c0_i32_0 : i32, i32
  }
  func.func @transform_4(%arg0: i32, %arg1: i32) -> (i32, i32) {
    %c0_i32 = arith.constant 0 : i32
    %c0_i32_0 = arith.constant 0 : i32
    %c0_i32_1 = arith.constant 0 : i32
    return %c0_i32, %c0_i32_0 : i32, i32
  }
  func.func @transform_5(%arg0: i32, %arg1: i32) -> (i32, i32) {
    %c0_i32 = arith.constant 0 : i32
    %c0_i32_0 = arith.constant 0 : i32
    %c0_i32_1 = arith.constant 0 : i32
    return %c0_i32, %c0_i32_0 : i32, i32
  }
  func.func @transform_6(%arg0: i32, %arg1: i32) -> (i32, i32) {
    %c0_i32 = arith.constant 0 : i32
    %c0_i32_0 = arith.constant 0 : i32
    %c0_i32_1 = arith.constant 0 : i32
    return %c0_i32, %c0_i32_0 : i32, i32
  }
  func.func @transform_7(%arg0: i32, %arg1: i32) -> (i32, i32) {
    %c0_i32 = arith.constant 0 : i32
    %c0_i32_0 = arith.constant 0 : i32
    %c0_i32_1 = arith.constant 0 : i32
    return %c0_i32, %c0_i32_0 : i32, i32
  }
  func.func @transform_8(%arg0: i32, %arg1: i32) -> (i32, i32) {
    %c0_i32 = arith.constant 0 : i32
    %c0_i32_0 = arith.constant 0 : i32
    %c0_i32_1 = arith.constant 0 : i32
    return %c0_i32, %c0_i32_0 : i32, i32
  }
  func.func @transform_9(%arg0: i32, %arg1: i32) -> (i32, i32) {
    %c0_i32 = arith.constant 0 : i32
    %c0_i32_0 = arith.constant 0 : i32
    %c0_i32_1 = arith.constant 0 : i32
    return %c0_i32, %c0_i32_0 : i32, i32
  }
  func.func @transform_10(%arg0: i32, %arg1: i32) -> (i32, i32) {
    %c0_i32 = arith.constant 0 : i32
    %c0_i32_0 = arith.constant 0 : i32
    %c0_i32_1 = arith.constant 0 : i32
    return %c0_i32, %c0_i32_0 : i32, i32
  }
  func.func @transform_11(%arg0: i32, %arg1: i32) -> (i32, i32) {
    %c0_i32 = arith.constant 0 : i32
    %c0_i32_0 = arith.constant 0 : i32
    %c0_i32_1 = arith.constant 0 : i32
    return %c0_i32, %c0_i32_0 : i32, i32
  }
  func.func @transform_12(%arg0: i32, %arg1: i32) -> (i32, i32) {
    %c0_i32 = arith.constant 0 : i32
    %c0_i32_0 = arith.constant 0 : i32
    %c0_i32_1 = arith.constant 0 : i32
    return %c0_i32, %c0_i32_0 : i32, i32
  }
  func.func @transform_13(%arg0: i32, %arg1: i32) -> (i32, i32, i32, i32) {
    %c0_i32 = arith.constant 0 : i32
    %c0_i32_0 = arith.constant 0 : i32
    %c0_i32_1 = arith.constant 0 : i32
    return %c0_i32, %arg0, %c0_i32_0, %arg1 : i32, i32, i32, i32
  }
  func.func @transform_14(%arg0: i32, %arg1: i32) -> (i32, i32, i32, i32) {
    %c0_i32 = arith.constant 0 : i32
    %c0_i32_0 = arith.constant 0 : i32
    %c0_i32_1 = arith.constant 0 : i32
    return %c0_i32, %arg0, %c0_i32_0, %arg1 : i32, i32, i32, i32
  }
}

</mosaic_0001>

<bundles_post_ra>
// kernel: decoder_forward.1
= control target key start
LH: loop header
LB: loop body
LE: loop exit
PB: predicated region body
PF: predicated region fallthrough
CT: control target
= control target key end

     0   :  { %s2086_s0 = inlined_call_operand.vmem [shape: f32[2,4,128], index: 0, kind: input, shape index: {}]   ;;  %s2087_s1 = inlined_call_operand.vmem [shape: f32[2,32,2], index: 1, kind: input, shape index: {}]   ;;  %s2088_s2 = inlined_call_operand.vmem [shape: f32[32,4], index: 2, kind: input, shape index: {}]   ;;  %s2089_s3 = inlined_call_operand.vmem [shape: f32[32,32], index: 3, kind: input, shape index: {}]   ;;  %s2090_s4 = inlined_call_operand.vmem [shape: f32[32,1], index: 4, kind: input, shape index: {}]   ;;  %s2091_s5 = inlined_call_operand.vmem [shape: f32[32,32], index: 5, kind: input, shape index: {}]   ;;  %s2092_s6 = inlined_call_operand.vmem [shape: f32[32,1], index: 6, kind: input, shape index: {}]   ;;  %s2093_s7 = inlined_call_operand.vmem [shape: f32[32,32], index: 7, kind: input, shape index: {}]   ;;  %s2094_s8 = inlined_call_operand.vmem [shape: f32[32,1], index: 8, kind: input, shape index: {}]   ;;  %s2095_s9 = inlined_call_operand.vmem [shape: f32[2,32], index: 9, kind: input, shape index: {}]   ;;  %s2096_s10 = inlined_call_operand.vmem [shape: f32[2,1], index: 10, kind: input, shape index: {}]   ;;  %s2097_s11 = inlined_call_operand.vmem [shape: f32[2,32], index: 11, kind: input, shape index: {}]   ;;  %s2098_s12 = inlined_call_operand.vmem [shape: f32[2,1], index: 12, kind: input, shape index: {}]   ;;  %s2099_s13 = inlined_call_operand.hbm [shape: f32[2,2,2,128], index: 13, kind: output, shape index: {0}]   ;;  %s2100_s14 = inlined_call_operand.hbm [shape: f32[2,2,2,128], index: 14, kind: output, shape index: {1}]  }
   0x1   :  { %2109 = sst [smem:[#allocation15_spill]] %s2086_s0 }
   0x2   :  { %2110 = sst [smem:[#allocation16_spill]] %s2087_s1 }
   0x3   :  { %20 = vsyncpa [#allocation3], 0 }
   0x4   :  { %22 = vsyncpa [#allocation3 + $0x1], 0 }
   0x5   :  { %23 = vsyncpa [#allocation5], 0 }
   0x6   :  { %25 = vsyncpa [#allocation5 + $0x1], 0  ;;  %s1700_s29 = smov 0   ;;  %s1702_s30 = smov 0  }
   0x7   :  { %s1704_s15 = smov 0   ;;  %s1706_s16 = smov 0  }
   0x8   :  { %s1708_s17 = smov 0   ;;  %s1710_s18 = smov 0  }
   0x9 LB: > { %2111 = sst [smem:[#allocation8_spill]] %s1598_s29  ;;  %s1313_s19 = sadd.s32 4294967295, %s1618_s18   ;;  %s1618_s18 = sphi %s1710_s18, %s31_s18   ;;  %s1614_s17 = sphi %s1708_s17, %s2129_s17   ;;  %s1610_s16 = sphi %s1706_s16, %s2128_s16   ;;  %s1606_s15 = sphi %s1704_s15, %s2127_s15   ;;  %s1602_s30 = sphi %s1702_s30, %s2131_s30   ;;  %s1598_s29 = sphi %s1700_s29, %s2130_s29  }
   0xa   : > { %2112 = sst [smem:[#allocation9_spill]] %s1606_s15  ;;  %s1314_s20 = sadd.s32 4294967294, %s1618_s18  }
   0xb   : > { %2113 = sst [smem:[#allocation10_spill]] %s1614_s17  ;;  %s43_s21 = sadd.s32 1, %s1614_s17 }
   0xc   : > { %2114 = sst [smem:[#allocation11_spill]] %s1618_s18  ;;  %s337_s22 = sadd.s32 1, %s1606_s15 }
   0xd   : > { %p45_p0 = scmp.ge.s32.totalorder %s43_s21, 2  ;;  %p347_p1 = scmp.ne.s32.totalorder %s1606_s15, %s1602_s30 }
   0xe   : > { %p348_p2 = scmp.eq.s32.totalorder %s1313_s19, 1  ;;  %p353_p3 = scmp.ne.s32.totalorder %s1602_s30, %s1598_s29 }
   0xf   : > { %s2133_s21 = smov (%p45_p0, %s43_s21), 0  ;;  %p354_p5 = scmp.eq.s32.totalorder %s1314_s20, 1 }
  0x10   : > { %2115 = sst [smem:[#allocation12_spill]] %s2133_s21  ;;  %p1740_p4 = por %p348_p2, %p347_p1 }
  0x11   : > { %s332_s24 = ssub.s32 %s1614_s17, %s2133_s21  ;;  %p1317_p6 = scmp.ge.s32.totalorder %s1618_s18, 1 }
  0x12   : > { %p335_p7 = scmp.eq.s32.totalorder %s332_s24, 0  ;;  %p1747_p8 = por %p354_p5, %p353_p3 }
  0x13   : > { %p451_p9 = scmp.lt.s32.totalorder %s1618_s18, 3 }
  0x14   : > { %s2117_s25 = scalar_select %p1747_p8, 1, 0 }
  0x15   : > { %s1753_s26 = scalar_select %p335_p7, %s1606_s15, %s337_s22  }
  0x16   : > { %2118 = sst [smem:[#allocation13_spill]] %s2117_s25  ;;  %p452_p10 = pnand %p1317_p6, %p451_p9 }
  0x17   : > { %2119 = sst [smem:[#allocation14_spill]] %s1753_s26  ;;  %p509_p11 = scmp.lt.s32.totalorder (!%p452_p10), %s1610_s16, 1 }
  0x18   : > { %455 = sbr.rel (%p452_p10) target bundleno = 1089 (0x441), region = 72  ;;  %s2120_s1 = sld [smem:[#allocation16_spill]] (!%p452_p10) }
  0x19   : > { %s2121_s0 = sld [smem:[#allocation15_spill]] (!%p452_p10)  ;;  %s2108_s22 = sshll.u32 (!%p452_p10), %s1610_s16, 1 }
  0x1a   : > { %s1172_s15 = scalar_lea.hbm (!%p452_p10), %s2099_s13, %s2108_s22  ;;  %s1528_s27 = scalar_lea.hbm (!%p452_p10), %s2099_s13, 8 }
  0x1b   : > { %s1175_s29 = sshll.u32 (!%p452_p10), %s1172_s15, 4  ;;  %s1176_s29 = int_to_ptr.hbm [resolvable:$true] %s1175_s29 }
  0x1d   : > { %v1620_v0 = vmov 0   ;;  %v583_v1 = vld [vmem:[%s2090_s4 + $0x18] sm:$0xff]  ;;  %s510_s19 = scalar_select %p509_p11, %s1610_s16, 1  ;;  %vm539_vm0 = vcmask 1043456   ;;  %v522_v2 = vld [vmem:[%s2088_s2] sm:$0xff]  ;;  %vm526_vm1 = vcmask 31744  }
  0x1e   : > { %1431 = vset.pattern.permute.xlu1 %v1620_v0  ;;  %1430 = vset.pattern.permute.xlu0 %v1620_v0  ;;  %v582_v6 = vld [vmem:[%s2090_s4 + $0x10] sm:$0xff]  ;;  %v523_v8 = vld [vmem:[%s2088_s2 + $0x8] sm:$0xff]  ;;  %v1621_v10 = vmov 1   ;;  %v580_v11 = vld [vmem:[%s2090_s4] sm:$0xff]  ;;  %vm664_vm2 = vcmask 261120  }
  0x1f   : > { %1432 = vset.pattern.permute.xlu2 %v1620_v0  ;;  %s1364_s20 = sshll.u32 %s510_s19, 5  ;;  %s1320_s24 = sshll.u32 %s510_s19, 2  ;;  %v524_v12 = vld [vmem:[%s2088_s2 + $0x10] sm:$0xff]  ;;  %v581_v13 = vld [vmem:[%s2090_s4 + $0x8] sm:$0xff]  ;;  %v525_v14 = vld [vmem:[%s2088_s2 + $0x18] sm:$0xff] }
  0x20   : > { %661 = vperm.xlu2 %1432, %v583_v1   ;;  %s520_s17 = scalar_lea.vmem %s2120_s1, %s1364_s20  ;;  %s515_s25 = scalar_lea.vmem %s2121_s0, %s1320_s24  ;;  %v1803_v43 = vld [vmem:[%s2089_s3] sm:$0xff]  ;;  %v1810_v44 = vld [vmem:[%s2089_s3 + $0x8] sm:$0xff]  ;;  %v1817_v45 = vld [vmem:[%s2089_s3 + $0x10] sm:$0xff] }
  0x21   : > { %v573_v3 = vld [vmem:[%s520_s17 + $0x8] sm:$0xff]  ;;  %v521_v4 = vld [vmem:[%s515_s25] sm:$0xf]  ;;  %v575_v5 = vld [vmem:[%s520_s17 + $0x18] sm:$0xff]  ;;  %s2000_s19 = sand.u32 1, %s1602_s30   ;;  %s1522_s25 = sshra.s32 %s1176_s29, 4  ;;  %s1523_s25 = int_to_ptr.hbm [resolvable:$true] %s1522_s25 }
  0x22   : > { %611 = vperm.xlu1 %1431, %v573_v3   ;;  %1323 = vmatpush.msk.msra.mxu0 %vm539_vm0, %v521_v4  ;;  %v572_v7 = vld [vmem:[%s520_s17] sm:$0xff]  ;;  %v574_v9 = vld [vmem:[%s520_s17 + $0x10] sm:$0xff]  ;;  %v1824_v46 = vld [vmem:[%s2089_s3 + $0x18] sm:$0xff]  ;;  %s1318_s20 = sshll.u32 %s2000_s19, 2  ;;  %s1156_s18 = scalar_lea.sflag [#allocation3], %s2000_s19 }
  0x23   : > { %1324 = vmatmul.msk.f32.vlgmr.msra.gmra.mxu0 %vm526_vm1, %v522_v2  ;;  %621 = vperm.xlu0 %1430, %v575_v5   ;;  %v591_v59 = vld [vmem:[%s2092_s6 + $0x18] sm:$0xff]  ;;  %s2003_s17 = scalar_lea.vmem [#allocation2], %s1318_s20  ;;  %s2009_s24 = scalar_lea.vmem [#allocation4], %s1318_s20 }
  0x24   : > { %s1173_s26 = sshll.u32 %s2003_s17, 4  ;;  %s1524_s28 = scalar_lea.hbm %s1523_s25, 4  ;;  %s1174_s26 = int_to_ptr.vmem [resolvable:$true] %s1173_s26 }
  0x25   : > { %p1525_p12 = scmp.ne.s32.totalorder %s1523_s25, %s1524_s28  ;;  %p1529_p1 = scmp.lt.s32.totalorder %s1523_s25, %s2099_s13 }
  0x26   : > { %p1530_p2 = scmp.lt.s32.totalorder %s1528_s27, %s1524_s28 }
  0x27   : > { %p1526_p13 = pnand %p1525_p12, %p1740_p4 }
  0x28   : > { %656 = vperm.xlu2 %1432, %v582_v6   ;;  %p1531_p3 = por %p1530_p2, %p1529_p1 }
  0x29   : > { %p1527_p0 = pneg %p1526_p13 }
  0x2a   : > { %606 = vperm.xlu1 %1431, %v572_v7  }
  0x2b   : > { %1325 = vmatmul.msk.f32.gmra.mxu0 %vm526_vm1, %v523_v8  ;;  %616 = vperm.xlu0 %1430, %v574_v9   ;;  %p1532_p5 = pnand %p1531_p3, %p1527_p0 }
  0x30   : > { %1433 = vset.pattern.permute.xlu2 %v1621_v10 }
  0x31   : > { %950 = vperm.xlu2 %1433, %v575_v5  }
  0x32   : > { %646 = vperm.xlu1 %1431, %v580_v11   ;;  %v588_v11 = vld [vmem:[%s2092_s6] sm:$0xff] }
  0x33   : > { %1326 = vmatmul.msk.f32.gmra.mxu0 %vm526_vm1, %v524_v12  ;;  %651 = vperm.xlu0 %1430, %v581_v13  }
  0x39   : > { %938 = vperm.xlu2 %1433, %v572_v7  }
  0x3a   : > { %1435 = vset.pattern.permute.xlu1 %v1621_v10 }
  0x3b   : > { %942 = vperm.xlu1 %1435, %v573_v3   ;;  %1327 = vmatmul.msk.f32.gmra.mxu0 %vm526_vm1, %v525_v14 }
  0x3c   : > { %1434 = vset.pattern.permute.xlu0 %v1621_v10 }
  0x3d   : > { %946 = vperm.xlu0 %1434, %v574_v9  }
  0x41   : > { %1437 = vset.pattern.permute.xlu2 %v1620_v0 }
  0x43   : > { %1436 = vset.pattern.permute.xlu1 %v1620_v0 }
  0x44   : > { %739 = vperm.xlu1 %1436, %v591_v59  }
  0x45   : > { %1438 = vset.pattern.permute.xlu0 %v1620_v0 }
  0x4c   : > { %724 = vperm.xlu1 %1436, %v588_v11  }
  0x7a   : > { %v1828_v47 = vpop.permute.xlu2 %661 }
  0x82   : > { %v1830_v49 = vpop.permute.xlu2 %656 }
  0x8b   : > { %v951_v54 = vpop.permute.xlu2 %950 }
  0x93   : > { %v939_v5 = vpop.permute.xlu2 %938 }
  0x94   : > { %v612_v18 = vpop.permute.xlu1 %611 }
  0x95   : > { %v622_v17 = vpop.permute.xlu0 %621 }
  0x9c   : > { %v607_v23 = vpop.permute.xlu1 %606 }
  0x9d   : > { %v617_v20 = vpop.permute.xlu0 %616 }
  0xa0   : > { %v1794_v15 = vpop.f32.mrf.mxu0 }
  0xa1   : > { %v624_v24 = vadd.f32 %v607_v23, %v1794_v15  ;;  %v953_v8 = vadd.f32 %v939_v5, %v1794_v15  ;;  %v589_v23 = vld [vmem:[%s2092_s6 + $0x8] sm:$0xff] }
  0xa2   : > { %729 = vperm.xlu0 %1438, %v589_v23  }
  0xa3   : > { %v628_v30 = vmul.f32 0.5, %v624_v24  ;;  %v598_v24 = vld [vmem:[%s2094_s8 + $0x10] sm:$0xff] }
  0xa4   : > { %v1834_v52 = vpop.permute.xlu1 %646  ;;  %811 = vperm.xlu1 %1436, %v598_v24   ;;  %v1933_v24 = vld [vmem:[%s2093_s7 + $0x8] sm:$0xff] }
  0xa5   : > { %v1832_v51 = vpop.permute.xlu0 %651 }
  0xa8   : > { %v1796_v16 = vpop.f32.mrf.mxu0 }
  0xa9   : > { %v625_v22 = vadd.f32 %v612_v18, %v1796_v16  ;;  %v957_v18 = vmul.f32 0.5, %v953_v8 }
  0xab   : > { %v629_v27 = vmul.f32 0.5, %v625_v22 }
  0xad   : > { %v943_v1 = vpop.permute.xlu1 %942 }
  0xae   : > { %v954_v6 = vadd.f32 %v943_v1, %v1796_v16 }
  0xaf   : > { %v947_v60 = vpop.permute.xlu0 %946 }
  0xb0   : > { %v566_v19 = vpop.f32.mrf.mxu0  ;;  %v958_v13 = vmul.f32 0.5, %v954_v6 }
  0xb1   : > { %v626_v21 = vadd.f32 %v617_v20, %v566_v19  ;;  %v955_v2 = vadd.f32 %v947_v60, %v566_v19 }
  0xb3   : > { %v630_v25 = vmul.f32 0.5, %v626_v21  ;;  %v959_v9 = vmul.f32 0.5, %v955_v2 }
  0xb5   : > { %1440 = vtanh.f32 %v630_v25 }
  0xb6   : > { %1442 = vtanh.f32 %v629_v27  ;;  %v1909_v59 = vpop.permute.xlu1 %739 }
  0xb8   : > { %v569_v26 = vpop.f32.mrf.mxu0 }
  0xb9   : > { %v627_v28 = vadd.f32 %v622_v17, %v569_v26  ;;  %v956_v63 = vadd.f32 %v951_v54, %v569_v26  ;;  %v599_v54 = vld [vmem:[%s2094_s8 + $0x18] sm:$0xff] }
  0xbb   : > { %v631_v29 = vmul.f32 0.5, %v627_v28  ;;  %v1441_v31 = vpop.eup %1440  ;;  %v960_v7 = vmul.f32 0.5, %v956_v63 }
  0xbc   : > { %v1443_v32 = vpop.eup %1442  ;;  %v638_v35 = vadd.f32 1.0, %v1441_v31 }
  0xbd   : > { %1444 = vtanh.f32 %v631_v29  ;;  %v637_v38 = vadd.f32 1.0, %v1443_v32  ;;  %v1857_v32 = vld [vmem:[%s2091_s5] sm:$0xff] }
  0xbe   : > { %1446 = vtanh.f32 %v628_v30  ;;  %v642_v39 = vmul.f32 0.5, %v638_v35  ;;  %v1916_v63 = vpop.permute.xlu1 %724 }
  0xbf   : > { %v641_v41 = vmul.f32 0.5, %v637_v38 }
  0xc3   : > { %v1445_v33 = vpop.eup %1444 }
  0xc4   : > { %v639_v34 = vadd.f32 1.0, %v1445_v33  ;;  %v1447_v36 = vpop.eup %1446 }
  0xc5   : > { %v636_v40 = vadd.f32 1.0, %v1447_v36 }
  0xc6   : > { %v643_v37 = vmul.f32 0.5, %v639_v34 }
  0xc7   : > { %v640_v42 = vmul.f32 0.5, %v636_v40 }
  0xc8   : > { %689 = vmatpush.msra.mxu1 %v643_v37  ;;  %v603_v37 = vld [vmem:[%s2098_s12] sm:$0x3] }
  0xc9   : > { %906 = vperm.xlu1 %1436, %v603_v37  }
  0xca   : > { %690 = vmatpush.msra.mxu1 %v642_v39 }
  0xcc   : > { %691 = vmatpush.msra.mxu1 %v641_v41 }
  0xce   : > { %692 = vmatpush.msra.mxu1 %v640_v42  ;;  %v1867_v42 = vld [vmem:[%s2091_s5 + $0x8] sm:$0xff] }
  0xcf   : > { %1328 = vmatmul.msk.f32.vlgmr.msra.gmra.mxu1 %vm664_vm2, %v1803_v43 }
  0xd7   : > { %1329 = vmatmul.msk.f32.gmra.mxu1 %vm664_vm2, %v1810_v44 }
  0xdf   : > { %1330 = vmatmul.msk.f32.gmra.mxu1 %vm664_vm2, %v1817_v45 }
  0xe7   : > { %1331 = vmatmul.msk.f32.gmra.mxu1 %vm664_vm2, %v1824_v46 }
 0x14c   : > { %v694_v48 = vpop.f32.mrf.mxu1 }
 0x14d   : > { %v695_v57 = vadd.f32 %v694_v48, %v1834_v52  ;;  %v590_v48 = vld [vmem:[%s2092_s6 + $0x10] sm:$0xff] }
 0x14e   : > { %734 = vperm.xlu2 %1437, %v590_v48  }
 0x14f   : > { %v706_v3 = vmul.f32 0.5, %v695_v57  ;;  %v601_v57 = vld [vmem:[%s2096_s10] sm:$0x3] }
 0x154   : > { %v697_v50 = vpop.f32.mrf.mxu1 }
 0x155   : > { %v698_v56 = vadd.f32 %v697_v50, %v1832_v51  ;;  %v596_v50 = vld [vmem:[%s2094_s8] sm:$0xff] }
 0x156   : > { %801 = vperm.xlu0 %1438, %v596_v50   ;;  %816 = vperm.xlu2 %1437, %v599_v54  }
 0x157   : > { %v707_v61 = vmul.f32 0.5, %v698_v56  ;;  %v597_v56 = vld [vmem:[%s2094_s8 + $0x8] sm:$0xff] }
 0x15c   : > { %v700_v53 = vpop.f32.mrf.mxu1 }
 0x15d   : > { %v701_v55 = vadd.f32 %v700_v53, %v1830_v49  ;;  %v1880_v53 = vld [vmem:[%s2091_s5 + $0x10] sm:$0xff] }
 0x15e   : > { %1439 = vset.pattern.permute.xlu0 %v1621_v10  ;;  %806 = vperm.xlu2 %1437, %v597_v56  }
 0x15f   : > { %v708_v58 = vmul.f32 0.5, %v701_v55  ;;  %v1891_v55 = vld [vmem:[%s2091_s5 + $0x18] sm:$0xff] }
 0x161   : > { %1448 = vtanh.f32 %v708_v58 }
 0x162   : > { %1450 = vtanh.f32 %v707_v61  ;;  %v1911_v61 = vpop.permute.xlu0 %729 }
 0x164   : > { %v703_v62 = vpop.f32.mrf.mxu1 }
 0x165   : > { %v704_v0 = vadd.f32 %v703_v62, %v1828_v47 }
 0x166   : > { %878 = vperm.xlu2 %1437, %v601_v57  }
 0x167   : > { %v709_v4 = vmul.f32 0.5, %v704_v0  ;;  %v1449_v12 = vpop.eup %1448 }
 0x168   : > { %v1451_v14 = vpop.eup %1450  ;;  %v716_v16 = vadd.f32 1.0, %v1449_v12 }
 0x169   : > { %1452 = vtanh.f32 %v709_v4  ;;  %v715_v15 = vadd.f32 1.0, %v1451_v14 }
 0x16a   : > { %1454 = vtanh.f32 %v706_v3  ;;  %v720_v25 = vmul.f32 0.5, %v716_v16 }
 0x16b   : > { %1456 = vtanh.f32 %v960_v7  ;;  %v719_v28 = vmul.f32 0.5, %v715_v15 }
 0x16c   : > { %1458 = vtanh.f32 %v959_v9 }
 0x16d   : > { %1460 = vtanh.f32 %v958_v13 }
 0x16e   : > { %1462 = vtanh.f32 %v957_v18 }
 0x16f   : > { %v1453_v17 = vpop.eup %1452 }
 0x170   : > { %v717_v19 = vadd.f32 1.0, %v1453_v17  ;;  %v1455_v20 = vpop.eup %1454 }
 0x171   : > { %v1457_v22 = vpop.eup %1456  ;;  %v714_v26 = vadd.f32 1.0, %v1455_v20 }
 0x172   : > { %v721_v21 = vmul.f32 0.5, %v717_v19  ;;  %v1459_v27 = vpop.eup %1458  ;;  %v968_v29 = vadd.f32 1.0, %v1457_v22 }
 0x173   : > { %v1461_v30 = vpop.eup %1460  ;;  %v718_v31 = vmul.f32 0.5, %v714_v26  ;;  %v967_v33 = vadd.f32 1.0, %v1459_v27 }
 0x174   : > { %766 = vmatpush.msra.mxu2 %v721_v21  ;;  %v1463_v34 = vpop.eup %1462  ;;  %v972_v35 = vmul.f32 0.5, %v968_v29  ;;  %v966_v36 = vadd.f32 1.0, %v1461_v30  ;;  %v1924_v21 = vld [vmem:[%s2093_s7] sm:$0xff] }
 0x175   : > { %v971_v38 = vmul.f32 0.5, %v967_v33  ;;  %v965_v39 = vadd.f32 1.0, %v1463_v34 }
 0x176   : > { %767 = vmatpush.msra.mxu2 %v720_v25  ;;  %v970_v40 = vmul.f32 0.5, %v966_v36 }
 0x177   : > { %v969_v41 = vmul.f32 0.5, %v965_v39 }
 0x178   : > { %768 = vmatpush.msra.mxu2 %v719_v28 }
 0x17a   : > { %769 = vmatpush.msra.mxu2 %v718_v31 }
 0x17b   : > { %1332 = vmatmul.msk.f32.vlgmr.msra.gmra.mxu2 %vm664_vm2, %v1857_v32 }
 0x17c   : > { %985 = vmatpush.msrb.mxu2 %v972_v35 }
 0x17e   : > { %986 = vmatpush.msrb.mxu2 %v971_v38 }
 0x180   : > { %987 = vmatpush.msrb.mxu2 %v970_v40 }
 0x182   : > { %988 = vmatpush.msrb.mxu2 %v969_v41 }
 0x183   : > { %1333 = vmatmul.msk.f32.gmra.mxu2 %vm664_vm2, %v1867_v42 }
 0x18b   : > { %1334 = vmatmul.msk.f32.gmra.mxu2 %vm664_vm2, %v1880_v53 }
 0x193   : > { %1335 = vmatmul.msk.f32.gmra.mxu2 %vm664_vm2, %v1891_v55 }
 0x19b   : > { %1342 = vmatmul.msk.f32.vlgmr.msrb.gmra.mxu2 %vm664_vm2, %v1803_v43 }
 0x1a3   : > { %1343 = vmatmul.msk.f32.gmra.mxu2 %vm664_vm2, %v1810_v44 }
 0x1a8   : > { %v1913_v62 = vpop.permute.xlu2 %734 }
 0x1ab   : > { %1344 = vmatmul.msk.f32.gmra.mxu2 %vm664_vm2, %v1817_v45 }
 0x1b0   : > { %v1961_v56 = vpop.permute.xlu2 %816 }
 0x1b3   : > { %1345 = vmatmul.msk.f32.gmra.mxu2 %vm664_vm2, %v1824_v46 }
 0x1fe   : > { %v771_v10 = vpop.f32.mrf.mxu2 }
 0x1ff   : > { %v772_v45 = vadd.f32 %v771_v10, %v1916_v63  ;;  %v1963_v10 = vpop.permute.xlu1 %811 }
 0x201   : > { %v783_v3 = vmul.f32 0.5, %v772_v45 }
 0x206   : > { %v774_v58 = vpop.f32.mrf.mxu2 }
 0x207   : > { %v775_v44 = vadd.f32 %v774_v58, %v1911_v61  ;;  %v1965_v58 = vpop.permute.xlu2 %806 }
 0x209   : > { %v784_v1 = vmul.f32 0.5, %v775_v44 }
 0x20e   : > { %v777_v60 = vpop.f32.mrf.mxu2 }
 0x20f   : > { %v778_v43 = vadd.f32 %v777_v60, %v1913_v62 }
 0x211   : > { %v785_v0 = vmul.f32 0.5, %v778_v43 }
 0x213   : > { %1464 = vtanh.f32 %v785_v0 }
 0x214   : > { %1466 = vtanh.f32 %v784_v1 }
 0x216   : > { %v780_v46 = vpop.f32.mrf.mxu2 }
 0x217   : > { %v781_v2 = vadd.f32 %v780_v46, %v1909_v59 }
 0x219   : > { %v786_v4 = vmul.f32 0.5, %v781_v2  ;;  %v1465_v6 = vpop.eup %1464 }
 0x21a   : > { %v1467_v7 = vpop.eup %1466  ;;  %v793_v11 = vadd.f32 1.0, %v1465_v6 }
 0x21b   : > { %1468 = vtanh.f32 %v786_v4  ;;  %v792_v14 = vadd.f32 1.0, %v1467_v7 }
 0x21c   : > { %1470 = vtanh.f32 %v783_v3  ;;  %v797_v18 = vmul.f32 0.5, %v793_v11 }
 0x21d   : > { %v796_v16 = vmul.f32 0.5, %v792_v14 }
 0x21e   : > { %v990_v5 = vpop.f32.mrf.mxu2 }
 0x21f   : > { %v991_v25 = vadd.f32 %v990_v5, %v1834_v52 }
 0x221   : > { %v1469_v8 = vpop.eup %1468  ;;  %v1002_v30 = vmul.f32 0.5, %v991_v25 }
 0x222   : > { %v794_v9 = vadd.f32 1.0, %v1469_v8  ;;  %v1471_v12 = vpop.eup %1470 }
 0x223   : > { %v791_v19 = vadd.f32 1.0, %v1471_v12 }
 0x224   : > { %v798_v13 = vmul.f32 0.5, %v794_v9 }
 0x225   : > { %v795_v20 = vmul.f32 0.5, %v791_v19 }
 0x226   : > { %843 = vmatpush.msra.mxu3 %v798_v13  ;;  %v993_v17 = vpop.f32.mrf.mxu2 }
 0x227   : > { %v994_v23 = vadd.f32 %v993_v17, %v1832_v51  ;;  %v1942_v51 = vld [vmem:[%s2093_s7 + $0x10] sm:$0xff] }
 0x228   : > { %844 = vmatpush.msra.mxu3 %v797_v18  ;;  %v1976_v18 = vld [vmem:[%s2095_s9] sm:$0x3] }
 0x229   : > { %v1003_v27 = vmul.f32 0.5, %v994_v23 }
 0x22a   : > { %845 = vmatpush.msra.mxu3 %v796_v16 }
 0x22c   : > { %846 = vmatpush.msra.mxu3 %v795_v20 }
 0x22d   : > { %1336 = vmatmul.msk.f32.vlgmr.msra.gmra.mxu3 %vm664_vm2, %v1924_v21 }
 0x22e   : > { %v996_v15 = vpop.f32.mrf.mxu2 }
 0x22f   : > { %v997_v22 = vadd.f32 %v996_v15, %v1830_v49  ;;  %v1985_v15 = vld [vmem:[%s2097_s11] sm:$0x3] }
 0x231   : > { %v1004_v26 = vmul.f32 0.5, %v997_v22 }
 0x233   : > { %1472 = vtanh.f32 %v1004_v26 }
 0x234   : > { %1474 = vtanh.f32 %v1003_v27 }
 0x235   : > { %1337 = vmatmul.msk.f32.gmra.mxu3 %vm664_vm2, %v1933_v24 }
 0x236   : > { %v999_v28 = vpop.f32.mrf.mxu2 }
 0x237   : > { %v1000_v29 = vadd.f32 %v999_v28, %v1828_v47  ;;  %v1949_v47 = vld [vmem:[%s2093_s7 + $0x18] sm:$0xff] }
 0x239   : > { %v1005_v49 = vmul.f32 0.5, %v1000_v29  ;;  %v1473_v52 = vpop.eup %1472 }
 0x23a   : > { %v1475_v31 = vpop.eup %1474  ;;  %v1012_v35 = vadd.f32 1.0, %v1473_v52 }
 0x23b   : > { %1476 = vtanh.f32 %v1005_v49  ;;  %v1011_v38 = vadd.f32 1.0, %v1475_v31 }
 0x23c   : > { %1478 = vtanh.f32 %v1002_v30  ;;  %v1016_v39 = vmul.f32 0.5, %v1012_v35 }
 0x23d   : > { %1338 = vmatmul.msk.f32.gmra.mxu3 %vm664_vm2, %v1942_v51  ;;  %v1015_v41 = vmul.f32 0.5, %v1011_v38 }
 0x241   : > { %v1477_v33 = vpop.eup %1476 }
 0x242   : > { %v1013_v34 = vadd.f32 1.0, %v1477_v33  ;;  %v1479_v36 = vpop.eup %1478 }
 0x243   : > { %v1010_v40 = vadd.f32 1.0, %v1479_v36 }
 0x244   : > { %v1017_v37 = vmul.f32 0.5, %v1013_v34 }
 0x245   : > { %1339 = vmatmul.msk.f32.gmra.mxu3 %vm664_vm2, %v1949_v47  ;;  %v1014_v48 = vmul.f32 0.5, %v1010_v40 }
 0x246   : > { %1030 = vmatpush.msrb.mxu3 %v1017_v37  ;;  %v879_v37 = vpop.permute.xlu2 %878 }
 0x248   : > { %1031 = vmatpush.msrb.mxu3 %v1016_v39 }
 0x24a   : > { %1032 = vmatpush.msrb.mxu3 %v1015_v41 }
 0x24c   : > { %1033 = vmatpush.msrb.mxu3 %v1014_v48 }
 0x24d   : > { %1346 = vmatmul.msk.f32.vlgmr.msrb.gmra.mxu3 %vm664_vm2, %v1857_v32 }
 0x255   : > { %1347 = vmatmul.msk.f32.gmra.mxu3 %vm664_vm2, %v1867_v42  ;;  %v1969_v42 = vpop.permute.xlu0 %801 }
 0x25d   : > { %1348 = vmatmul.msk.f32.gmra.mxu3 %vm664_vm2, %v1880_v53 }
 0x265   : > { %1349 = vmatmul.msk.f32.gmra.mxu3 %vm664_vm2, %v1891_v55 }
 0x2b0   : > { %v848_v50 = vpop.f32.mrf.mxu3 }
 0x2b1   : > { %v849_v53 = vadd.f32 %v848_v50, %v1969_v42 }
 0x2b3   : > { %v860_v0 = vmul.f32 0.5, %v849_v53 }
 0x2b8   : > { %v851_v54 = vpop.f32.mrf.mxu3 }
 0x2b9   : > { %v852_v60 = vadd.f32 %v851_v54, %v1965_v58 }
 0x2bb   : > { %v861_v44 = vmul.f32 0.5, %v852_v60 }
 0x2c0   : > { %v854_v57 = vpop.f32.mrf.mxu3 }
 0x2c1   : > { %v855_v32 = vadd.f32 %v854_v57, %v1963_v10 }
 0x2c3   : > { %v862_v43 = vmul.f32 0.5, %v855_v32 }
 0x2c5   : > { %1480 = vtanh.f32 %v862_v43 }
 0x2c6   : > { %1482 = vtanh.f32 %v861_v44 }
 0x2c8   : > { %v857_v55 = vpop.f32.mrf.mxu3 }
 0x2c9   : > { %v858_v45 = vadd.f32 %v857_v55, %v1961_v56 }
 0x2cb   : > { %v863_v1 = vmul.f32 0.5, %v858_v45  ;;  %v1481_v2 = vpop.eup %1480 }
 0x2cc   : > { %v1483_v3 = vpop.eup %1482  ;;  %v870_v6 = vadd.f32 1.0, %v1481_v2 }
 0x2cd   : > { %1484 = vtanh.f32 %v863_v1  ;;  %v869_v9 = vadd.f32 1.0, %v1483_v3 }
 0x2ce   : > { %1486 = vtanh.f32 %v860_v0  ;;  %v874_v12 = vmul.f32 0.5, %v870_v6 }
 0x2cf   : > { %v873_v14 = vmul.f32 0.5, %v869_v9 }
 0x2d0   : > { %v1035_v46 = vpop.f32.mrf.mxu3 }
 0x2d1   : > { %v1036_v22 = vadd.f32 %v1035_v46, %v1916_v63 }
 0x2d3   : > { %v1485_v4 = vpop.eup %1484 }
 0x2d4   : > { %v871_v5 = vadd.f32 1.0, %v1485_v4  ;;  %v1487_v7 = vpop.eup %1486 }
 0x2d5   : > { %v868_v13 = vadd.f32 1.0, %v1487_v7 }
 0x2d6   : > { %v875_v8 = vmul.f32 0.5, %v871_v5 }
 0x2d7   : > { %v872_v17 = vmul.f32 0.5, %v868_v13 }
 0x2d8   : > { %896 = vmatpush.msrb.mxu1 %v875_v8  ;;  %v1038_v11 = vpop.f32.mrf.mxu3 }
 0x2d9   : > { %v1039_v20 = vadd.f32 %v1038_v11, %v1911_v61 }
 0x2da   : > { %897 = vmatpush.msrb.mxu1 %v874_v12 }
 0x2db   : > { %v1048_v25 = vmul.f32 0.5, %v1039_v20 }
 0x2dc   : > { %898 = vmatpush.msrb.mxu1 %v873_v14 }
 0x2de   : > { %899 = vmatpush.msrb.mxu1 %v872_v17 }
 0x2df   : > { %1340 = vmatmul.msk.f32.vlgmr.msrb.gmra.mxu1 %vm664_vm2, %v1976_v18 }
 0x2e0   : > { %924 = vmatpush.msra.mxu1 %v875_v8  ;;  %v1041_v19 = vpop.f32.mrf.mxu3 }
 0x2e1   : > { %v1042_v16 = vadd.f32 %v1041_v19, %v1913_v62  ;;  %v1047_v62 = vmul.f32 0.5, %v1036_v22 }
 0x2e2   : > { %925 = vmatpush.msra.mxu1 %v874_v12 }
 0x2e3   : > { %v1049_v23 = vmul.f32 0.5, %v1042_v16 }
 0x2e4   : > { %926 = vmatpush.msra.mxu1 %v873_v14 }
 0x2e5   : > { %1488 = vtanh.f32 %v1049_v23 }
 0x2e6   : > { %927 = vmatpush.msra.mxu1 %v872_v17  ;;  %1490 = vtanh.f32 %v1048_v25 }
 0x2e7   : > { %1341 = vmatmul.msk.f32.vlgmr.msra.gmra.mxu1 %vm664_vm2, %v1985_v15 }
 0x2e8   : > { %v1044_v26 = vpop.f32.mrf.mxu3 }
 0x2e9   : > { %v1045_v27 = vadd.f32 %v1044_v26, %v1909_v59 }
 0x2eb   : > { %v1050_v61 = vmul.f32 0.5, %v1045_v27  ;;  %v1489_v28 = vpop.eup %1488 }
 0x2ec   : > { %v1491_v29 = vpop.eup %1490  ;;  %v1057_v52 = vadd.f32 1.0, %v1489_v28 }
 0x2ed   : > { %1492 = vtanh.f32 %v1050_v61  ;;  %v1056_v33 = vadd.f32 1.0, %v1491_v29 }
 0x2ee   : > { %1494 = vtanh.f32 %v1047_v62  ;;  %v1061_v34 = vmul.f32 0.5, %v1057_v52 }
 0x2ef   : > { %v1060_v59 = vmul.f32 0.5, %v1056_v33 }
 0x2f3   : > { %v1493_v30 = vpop.eup %1492 }
 0x2f4   : > { %v1058_v49 = vadd.f32 1.0, %v1493_v30  ;;  %v1495_v63 = vpop.eup %1494 }
 0x2f5   : > { %v1055_v35 = vadd.f32 1.0, %v1495_v63 }
 0x2f6   : > { %v1062_v31 = vmul.f32 0.5, %v1058_v49 }
 0x2f7   : > { %v1059_v36 = vmul.f32 0.5, %v1055_v35 }
 0x2f8   : > { %1075 = vmatpush.msrb.mxu0 %v1062_v31 }
 0x2fa   : > { %1076 = vmatpush.msrb.mxu0 %v1061_v34 }
 0x2fc   : > { %1077 = vmatpush.msrb.mxu0 %v1060_v59 }
 0x2fe   : > { %1078 = vmatpush.msrb.mxu0 %v1059_v36 }
 0x2ff   : > { %1350 = vmatmul.msk.f32.vlgmr.msrb.gmra.mxu0 %vm664_vm2, %v1924_v21  ;;  %v2006_v21 = vpop.permute.xlu1 %906 }
 0x307   : > { %1351 = vmatmul.msk.f32.gmra.mxu0 %vm664_vm2, %v1933_v24 }
 0x30f   : > { %1352 = vmatmul.msk.f32.gmra.mxu0 %vm664_vm2, %v1942_v51 }
 0x317   : > { %1353 = vmatmul.msk.f32.gmra.mxu0 %vm664_vm2, %v1949_v47 }
 0x35c   : > { %v901_v38 = vpop.f32.mrf.mxu1 }
 0x35d   : > { %v902_v39 = vadd.f32 %v901_v38, %v879_v37 }
 0x35f   : > { %932 = vst [vmem:[%s2003_s17] sm:$0x3] %v902_v39 }
 0x364   : > { %v929_v24 = vpop.f32.mrf.mxu1 }
 0x365   : > { %v930_v40 = vadd.f32 %v929_v24, %v2006_v21 }
 0x367   : > { %v933_v51 = vmul.f32 0.5, %v930_v40 }
 0x369   : > { %v934_v41 = vmul.f32 1.442695, %v933_v51 }
 0x36b   : > { %1496 = vpow2.f32 %v934_v41 }
 0x371   : > { %v1497_v47 = vpop.eup %1496 }
 0x372   : > { %936 = vst [vmem:[%s2009_s24] sm:$0x3] %v1497_v47 }
 0x37c   : > { %v1080_v48 = vpop.f32.mrf.mxu0 }
 0x37d   : > { %v1081_v60 = vadd.f32 %v1080_v48, %v1969_v42 }
 0x37f   : > { %v1092_v45 = vmul.f32 0.5, %v1081_v60 }
 0x384   : > { %v1083_v50 = vpop.f32.mrf.mxu0 }
 0x385   : > { %v1084_v32 = vadd.f32 %v1083_v50, %v1965_v58 }
 0x387   : > { %v1093_v43 = vmul.f32 0.5, %v1084_v32 }
 0x38c   : > { %v1086_v54 = vpop.f32.mrf.mxu0 }
 0x38d   : > { %v1087_v57 = vadd.f32 %v1086_v54, %v1963_v10 }
 0x38f   : > { %v1094_v53 = vmul.f32 0.5, %v1087_v57 }
 0x391   : > { %1498 = vtanh.f32 %v1094_v53 }
 0x392   : > { %1500 = vtanh.f32 %v1093_v43 }
 0x394   : > { %v1089_v44 = vpop.f32.mrf.mxu0 }
 0x395   : > { %v1090_v55 = vadd.f32 %v1089_v44, %v1961_v56 }
 0x397   : > { %v1095_v0 = vmul.f32 0.5, %v1090_v55  ;;  %v1499_v1 = vpop.eup %1498 }
 0x398   : > { %v1501_v46 = vpop.eup %1500  ;;  %v1102_v3 = vadd.f32 1.0, %v1499_v1 }
 0x399   : > { %1502 = vtanh.f32 %v1095_v0  ;;  %v1101_v58 = vadd.f32 1.0, %v1501_v46 }
 0x39a   : > { %1504 = vtanh.f32 %v1092_v45  ;;  %v1106_v6 = vmul.f32 0.5, %v1102_v3 }
 0x39b   : > { %v1105_v56 = vmul.f32 0.5, %v1101_v58 }
 0x39f   : > { %v1503_v2 = vpop.eup %1502 }
 0x3a0   : > { %v1103_v10 = vadd.f32 1.0, %v1503_v2  ;;  %v1505_v4 = vpop.eup %1504 }
 0x3a1   : > { %v1100_v5 = vadd.f32 1.0, %v1505_v4 }
 0x3a2   : > { %v1107_v42 = vmul.f32 0.5, %v1103_v10 }
 0x3a3   : > { %v1104_v7 = vmul.f32 0.5, %v1100_v5 }
 0x3a4   : > { %1120 = vmatpush.msrb.mxu1 %v1107_v42 }
 0x3a6   : > { %1121 = vmatpush.msrb.mxu1 %v1106_v6 }
 0x3a8   : > { %1122 = vmatpush.msrb.mxu1 %v1105_v56 }
 0x3aa   : > { %1123 = vmatpush.msrb.mxu1 %v1104_v7 }
 0x3ab   : > { %1354 = vmatmul.msk.f32.vlgmr.msrb.gmra.mxu1 %vm664_vm2, %v1976_v18 }
 0x3ac   : > { %1140 = vmatpush.msra.mxu1 %v1107_v42 }
 0x3ae   : > { %1141 = vmatpush.msra.mxu1 %v1106_v6 }
 0x3b0   : > { %1142 = vmatpush.msra.mxu1 %v1105_v56 }
 0x3b2   : > { %1143 = vmatpush.msra.mxu1 %v1104_v7 }
 0x3b3   : > { %1355 = vmatmul.msk.f32.vlgmr.msra.gmra.mxu1 %vm664_vm2, %v1985_v15 }
 0x428   : > { %v1125_v8 = vpop.f32.mrf.mxu1 }
 0x429   : > { %v1126_v9 = vadd.f32 %v1125_v8, %v879_v37 }
 0x42b   : > { %1356 = vst [vmem:[%s2003_s17 + $0x2] sm:$0x3] %v1126_v9 }
 0x42c   : > { %1535 = shalt.err (!%p1532_p5)
}
 0x42d   : > { %s1622_s17 = smov 32   ;;  %s1623_s15 = smov 64  }
 0x42e   : > { %s1624_s1 = smov 2   ;;  %s2122_s0 = sshll.u32 %s1610_s16, 1 }
 0x42f   : > { %1365 = dma.vmem_to_hbm [thread:$0]  (%p1740_p4), %s1174_s26, 64, %s1176_s29, %s1156_s18, %s1622_s17, %s1623_s15, %s1624_s1  }
 0x430   : > { %v1145_v11 = vpop.f32.mrf.mxu1  ;;  %s1189_s28 = scalar_lea.hbm %s2100_s14, %s2122_s0  ;;  %s1190_s20 = sshll.u32 %s2009_s24, 4  ;;  %s1191_s20 = int_to_ptr.vmem [resolvable:$true] %s1190_s20 }
 0x431   : > { %v1146_v12 = vadd.f32 %v1145_v11, %v2006_v21  ;;  %s1192_s27 = sshll.u32 %s1189_s28, 4  ;;  %s1161_s21 = scalar_lea.sflag [#allocation5], %s2000_s19  ;;  %s1193_s27 = int_to_ptr.hbm [resolvable:$true] %s1192_s27 }
 0x432   : > { %s1550_s26 = sshra.s32 %s1193_s27, 4  ;;  %s1556_s22 = scalar_lea.hbm %s2100_s14, 8  ;;  %s1551_s26 = int_to_ptr.hbm [resolvable:$true] %s1550_s26 }
 0x433   : > { %v1150_v13 = vmul.f32 0.5, %v1146_v12  ;;  %s1552_s29 = scalar_lea.hbm %s1551_s26, 4  ;;  %p1557_p10 = scmp.lt.s32.totalorder %s1551_s26, %s2100_s14 }
 0x434   : > { %p1553_p6 = scmp.ne.s32.totalorder %s1551_s26, %s1552_s29  ;;  %p1558_p11 = scmp.lt.s32.totalorder %s1556_s22, %s1552_s29 }
 0x435   : > { %v1151_v14 = vmul.f32 1.442695, %v1150_v13 }
 0x436   : > { %p1554_p7 = pnand %p1553_p6, %p1740_p4  ;;  %p1559_p12 = por %p1558_p11, %p1557_p10 }
 0x437   : > { %1506 = vpow2.f32 %v1151_v14 }
 0x438   : > { %p1555_p9 = pneg %p1554_p7 }
 0x43a   : > { %p1560_p13 = pnand %p1559_p12, %p1555_p9 }
 0x43d   : > { %v1507_v17 = vpop.eup %1506 }
 0x43e   : > { %1357 = vst [vmem:[%s2009_s24 + $0x2] sm:$0x3] %v1507_v17 }
 0x43f   : > { %1563 = shalt.err (!%p1560_p13)
}
 0x440   : > { %1366 = dma.vmem_to_hbm [thread:$0]  (%p1740_p4), %s1191_s20, 64, %s1193_s27, %s1161_s21, %s1622_s17, %s1623_s15, %s1624_s1  }
 0x441 PF: > { %s2123_s19 = sld [smem:[#allocation11_spill]] }
 0x442   : > { %s2124_s24 = sld [smem:[#allocation8_spill]] }
 0x447   : > { %p1376_p0 = scmp.ge.s32.totalorder %s2123_s19, 2 }
 0x448   : > { %s1207_s16 = sand.u32 1, %s2124_s24  }
 0x449   : > { %p1370_p1 = pnand %p1376_p0, %p1747_p8  ;;  %s1208_s26 = scalar_lea.sflag [#allocation3], %s1207_s16 }
 0x44b   : > { %p1371_p2 = pneg %p1370_p1 }
 0x44d   : > { %1589 = dma.done.wait (%p1371_p2), %s1208_s26, 64  }
 0x44e   : > { %1591 = vsyncadd (%p1371_p2), %s1208_s26, 4294967232  ;;  %s1218_s29 = scalar_lea.sflag [#allocation5], %s1207_s16 }
 0x44f   : > { %1593 = dma.done.wait (%p1371_p2), %s1218_s29, 64  }
 0x450   : > { %1595 = vsyncadd (%p1371_p2), %s1218_s29, 4294967232  ;;  %s31_s18 = sadd.s32 1, %s2123_s19   ;;  %s2126_s1 = sld [smem:[#allocation9_spill]] }
 0x451   : > { %p28_p3 = scmp.ge.s32.totalorder %s31_s18, 4   ;;  %s2127_s15 = sld [smem:[#allocation14_spill]] }
 0x452   : > { %s2128_s16 = sld [smem:[#allocation10_spill]]  ;;  %s2130_s29 = smov %s1602_s30 }
 0x453   : > { %s2129_s17 = sld [smem:[#allocation12_spill]]  ;;  %30 = sbr.rel (!%p28_p3) target bundleno = 9 (0x9), region = 129 }
 0x456   : > { %s2131_s30 = smov %s2126_s1 }
 0x458   :  { %1224 = vsyncpa [#allocation3], 1 }
 0x459   :  { %1226 = vsyncpa [#allocation3 + $0x1], 1 }
 0x45a   :  { %1227 = vsyncpa [#allocation5], 1 }
 0x45b   :  { %1229 = vsyncpa [#allocation5 + $0x1], 1 }

</bundles_post_ra>
